<compile_context>
chip_gen: v7x
topology: tpu7x:2x2x1
jax: 0.10.0
libtpu: 0.0.40
codegen_flags: <defaults>
</compile_context>

<pallas_src>
import jax
import jax.numpy as jnp
from jax.experimental import pallas as pl
from jax.experimental.pallas import tpu as pltpu


def _cf_kernel(resume_ref, job_ref, w1_ref, b1_ref, w2_ref, b2_ref,
               w3_ref, b3_ref, o_ref, x_ref):
    E = resume_ref.shape[1]
    cdt = w1_ref.dtype

    # Pack [resume | job] into the [TB, 2E] VMEM scratch (two static lane-slice
    # stores). The concatenated tensor never exists in HBM, and the single
    # K=2E matmul below halves layer-1 MXU pushes vs. two split K=E dots.
    x_ref[:, :E] = resume_ref[...].astype(cdt)
    x_ref[:, E:] = job_ref[...].astype(cdt)

    # Layer 1: Linear(2E -> 128) + ReLU (f32 accumulation, f32 bias/ReLU).
    h1 = jnp.dot(x_ref[...], w1_ref[...], preferred_element_type=jnp.float32)
    h1 = jnp.maximum(h1 + b1_ref[...], 0.0)                    # [TB, 128] f32

    # Layer 2: Linear(128 -> 64) + ReLU.
    h2 = jnp.dot(h1.astype(cdt), w2_ref[...],
                 preferred_element_type=jnp.float32) + b2_ref[...]
    h2 = jnp.maximum(h2, 0.0)                                   # [TB, 64] f32

    # Layer 3: Linear(64 -> 1) + sigmoid, kept fully f32 for score accuracy.
    # Computed as w3_row . h2^T so the TB scores land on the lane axis
    # (lane-dense (1, TB) store, no width-1 masked stores).
    # TODO(synk): verify in the bundle dump that Mosaic does not insert a
    # vxpose of h2 here; if it does, switch to h2 @ w3 with a (TB, 1) output.
    scores = jax.lax.dot_general(
        w3_ref[...], h2,
        dimension_numbers=(((1,), (1,)), ((), ())),
        preferred_element_type=jnp.float32)                     # [1, TB]
    scores = scores + b3_ref[0, 0]                              # scalar bias (SMEM)
    o_ref[...] = jax.nn.sigmoid(scores).astype(o_ref.dtype)


def collaborative_filtering_forward(resume_embedding, job_embedding, params, *,
                                    block_b=4096,
                                    compute_dtype=jnp.bfloat16,
                                    vmem_limit_bytes=32 * 1024 * 1024):
    """params: w1 (2E,128), b1 (1,128), w2 (128,64), b2 (1,64), w3 (64,1),
    b3 (1,1); weights stored as (in, out) so the kernel computes x @ W + b."""
    B, E = resume_embedding.shape
    assert job_embedding.shape == (B, E)

    cdt = jnp.dtype(compute_dtype) if compute_dtype is not None \
        else jnp.dtype(resume_embedding.dtype)

    # Weights are tiny: one-time casts / reshapes (negligible HBM traffic).
    w1 = params["w1"].astype(cdt)                               # (2E, 128) unsplit
    b1 = params["b1"].reshape(1, -1).astype(jnp.float32)        # (1, 128)
    w2 = params["w2"].astype(cdt)                               # (128, 64)
    b2 = params["b2"].reshape(1, -1).astype(jnp.float32)        # (1, 64)
    w3_row = params["w3"].reshape(1, -1).astype(jnp.float32)    # (1, 64) f32
    b3 = params["b3"].reshape(1, 1).astype(jnp.float32)         # SMEM scalar

    # ---- Batch tile: as large as a conservative VMEM budget allows. ----
    in_bytes = jnp.dtype(resume_embedding.dtype).itemsize
    per_row = (2 * 2 * E * in_bytes        # resume/job, double-buffered blocks
               + 2 * E * cdt.itemsize      # packed [TB, 2E] scratch
               + 128 * 4 + 64 * 4          # f32 h1 / h2 intermediates
               + 128 * cdt.itemsize        # h1 cast for layer 2
               + 2 * 4)                    # double-buffered f32 scores
    budget = max(vmem_limit_bytes // 2, 1 << 20)   # headroom under scoped limit
    if B <= 128:
        TB = B                                      # single exact block
    else:
        tb_cap = max(128, (budget // per_row) // 128 * 128)
        TB = max(128, min(block_b, tb_cap) // 128 * 128)
        TB = min(TB, -(-B // 128) * 128)            # never exceed round_up(B,128)
    num_tiles = pl.cdiv(B, TB)                      # ragged tail handled by Pallas

    batch_spec = pl.BlockSpec((TB, E), lambda i: (i, 0))
    resident = lambda a: pl.BlockSpec(a.shape, lambda i: (0,) * a.ndim)

    out = pl.pallas_call(
        _cf_kernel,
        out_shape=jax.ShapeDtypeStruct((1, B), jnp.float32),
        grid=(num_tiles,),
        in_specs=[batch_spec, batch_spec,
                  resident(w1), resident(b1),
                  resident(w2), resident(b2), resident(w3_row),
                  pl.BlockSpec(memory_space=pltpu.MemorySpace.SMEM)],
        out_specs=pl.BlockSpec((1, TB), lambda i: (0, i)),
        scratch_shapes=[pltpu.VMEM((TB, 2 * E), cdt)],
        compiler_params=pltpu.CompilerParams(
            dimension_semantics=("parallel",),
            vmem_limit_bytes=vmem_limit_bytes),
    )(resume_embedding, job_embedding, w1, b1, w2, b2, w3_row, b3)

    # Lane-dense (1, B) -> (B, 1) like the torch module.
    return out[0, :].reshape(B, 1)


def init_params(key, embedding_dim):
    """Deterministic init matching the torch module's layer shapes."""
    dims = [(embedding_dim * 2, 128), (128, 64), (64, 1)]
    params = {}
    for i, (fan_in, fan_out) in enumerate(dims, start=1):
        key, kw, kb = jax.random.split(key, 3)
        bound = 1.0 / jnp.sqrt(fan_in)
        params[f"w{i}"] = jax.random.uniform(
            kw, (fan_in, fan_out), jnp.float32, minval=-bound, maxval=bound)
        params[f"b{i}"] = jax.random.uniform(
            kb, (1, fan_out), jnp.float32, minval=-bound, maxval=bound)
    return params


def _reference(resume, job, params):
    combined = jnp.concatenate([resume, job], axis=1)
    h = jnp.maximum(combined @ params["w1"] + params["b1"], 0.0)
    h = jnp.maximum(h @ params["w2"] + params["b2"], 0.0)
    return jax.nn.sigmoid(h @ params["w3"] + params["b3"])


if __name__ == "__main__":
    key = jax.random.PRNGKey(0)
    embedding_dim = 32
    batch = 8

    k1, k2, kp, k3, k4 = jax.random.split(key, 5)
    resume_embedding = jax.random.normal(k1, (batch, embedding_dim), jnp.float32)
    job_embedding = jax.random.normal(k2, (batch, embedding_dim), jnp.float32)
    params = init_params(kp, embedding_dim)

    ref = _reference(resume_embedding, job_embedding, params)

    # Exact f32 compute path (tight tolerance).
    out_f32 = collaborative_filtering_forward(
        resume_embedding, job_embedding, params, compute_dtype=jnp.float32)
    out_f32 = jax.block_until_ready(out_f32)
    assert out_f32.shape == (batch, 1)
    assert jnp.allclose(out_f32, ref, atol=1e-5, rtol=1e-5)

    # Default bf16-MXU-operand path (f32 accumulation / bias / ReLU / sigmoid).
    out_bf16 = collaborative_filtering_forward(resume_embedding, job_embedding, params)
    out_bf16 = jax.block_until_ready(out_bf16)
    assert jnp.allclose(out_bf16, ref, atol=5e-2, rtol=5e-2)

    # Multi-tile path with a ragged tail and NO jnp.pad: B=160, TB=128 ->
    # grid=2, second block partial (out-of-bounds rows masked on writeback).
    big_resume = jax.random.normal(k3, (160, embedding_dim), jnp.float32)
    big_job = jax.random.normal(k4, (160, embedding_dim), jnp.float32)
    ref_big = _reference(big_resume, big_job, params)

    out_big_f32 = collaborative_filtering_forward(
        big_resume, big_job, params, block_b=128, compute_dtype=jnp.float32)
    out_big_f32 = jax.block_until_ready(out_big_f32)
    assert out_big_f32.shape == (160, 1)
    assert jnp.allclose(out_big_f32, ref_big, atol=1e-5, rtol=1e-5)

    out_big_bf16 = collaborative_filtering_forward(
        big_resume, big_job, params, block_b=128)
    out_big_bf16 = jax.block_until_ready(out_big_bf16)
    assert jnp.allclose(out_big_bf16, ref_big, atol=5e-2, rtol=5e-2)

    print("KERNEL_OK")
</pallas_src>

<mosaic_0001>
module attributes {stable_mosaic.version = 11 : i64} {
  func.func @_cf_kernel(%arg0: i32, %arg1: memref<8x32xf32, #tpu.memory_space<vmem>>, %arg2: memref<8x32xf32, #tpu.memory_space<vmem>>, %arg3: memref<64x128xf32, #tpu.memory_space<vmem>>, %arg4: memref<1x128xf32, #tpu.memory_space<vmem>>, %arg5: memref<128x64xf32, #tpu.memory_space<vmem>>, %arg6: memref<1x64xf32, #tpu.memory_space<vmem>>, %arg7: memref<1x64xf32, #tpu.memory_space<vmem>>, %arg8: memref<1x1xf32, #tpu.memory_space<smem>>, %arg9: memref<1x8xf32, #tpu.memory_space<vmem>>, %arg10: memref<8x64xf32, #tpu.memory_space<vmem>>) attributes {dimension_semantics = [#tpu.dimension_semantics<parallel>], iteration_bounds = array<i64: 1>, scalar_prefetch = 0 : i64, scratch_operands = 1 : i64, tpu.core_type = #tpu.core_type<tc>, window_params = [{transform_indices = @transform_0, window_bounds = array<i64: 8, 32>}, {transform_indices = @transform_1, window_bounds = array<i64: 8, 32>}, {pipeline_mode = #tpu.pipeline_mode<synchronous>, transform_indices = @transform_2, window_bounds = array<i64: 64, 128>}, {pipeline_mode = #tpu.pipeline_mode<synchronous>, transform_indices = @transform_3, window_bounds = array<i64: 1, 128>}, {pipeline_mode = #tpu.pipeline_mode<synchronous>, transform_indices = @transform_4, window_bounds = array<i64: 128, 64>}, {pipeline_mode = #tpu.pipeline_mode<synchronous>, transform_indices = @transform_5, window_bounds = array<i64: 1, 64>}, {pipeline_mode = #tpu.pipeline_mode<synchronous>, transform_indices = @transform_6, window_bounds = array<i64: 1, 64>}, {transform_indices = @transform_7, window_bounds = array<i64: 1, 1>}, {transform_indices = @transform_8, window_bounds = array<i64: 1, 8>}]} {
    %c0 = arith.constant 0 : index
    %c0_0 = arith.constant 0 : index
    %0 = vector.load %arg1[%c0, %c0_0] : memref<8x32xf32, #tpu.memory_space<vmem>>, vector<8x32xf32>
    %c0_1 = arith.constant 0 : index
    %c0_2 = arith.constant 0 : index
    %1 = vector.load %arg10[%c0_1, %c0_2] : memref<8x64xf32, #tpu.memory_space<vmem>>, vector<8x32xf32>
    tpu.vector_store %arg10[%c0_1, %c0_2], %0 {strides = array<i32>} : memref<8x64xf32, #tpu.memory_space<vmem>>, vector<8x32xf32>,
    %c0_3 = arith.constant 0 : index
    %c0_4 = arith.constant 0 : index
    %2 = vector.load %arg2[%c0_3, %c0_4] : memref<8x32xf32, #tpu.memory_space<vmem>>, vector<8x32xf32>
    %c0_5 = arith.constant 0 : index
    %c32 = arith.constant 32 : index
    %3 = vector.load %arg10[%c0_5, %c32] : memref<8x64xf32, #tpu.memory_space<vmem>>, vector<8x32xf32>
    tpu.vector_store %arg10[%c0_5, %c32], %2 {strides = array<i32>} : memref<8x64xf32, #tpu.memory_space<vmem>>, vector<8x32xf32>,
    %c0_6 = arith.constant 0 : index
    %c0_7 = arith.constant 0 : index
    %4 = vector.load %arg10[%c0_6, %c0_7] : memref<8x64xf32, #tpu.memory_space<vmem>>, vector<8x64xf32>
    %c0_8 = arith.constant 0 : index
    %c0_9 = arith.constant 0 : index
    %5 = vector.load %arg3[%c0_8, %c0_9] : memref<64x128xf32, #tpu.memory_space<vmem>>, vector<64x128xf32>
    %cst = arith.constant dense<0.000000e+00> : vector<8x128xf32>
    %6 = tpu.matmul %4, %5, %cst {dimension_numbers = #tpu.dot_dimension_numbers<[1], [0], [0], [1], [0, 0, 1, 1], [], []>} : vector<8x64xf32>, vector<64x128xf32>, vector<8x128xf32> -> vector<8x128xf32>
    %c0_10 = arith.constant 0 : index
    %c0_11 = arith.constant 0 : index
    %7 = vector.load %arg4[%c0_10, %c0_11] : memref<1x128xf32, #tpu.memory_space<vmem>>, vector<1x128xf32>
    %8 = vector.broadcast %7 : vector<1x128xf32> to vector<8x128xf32>
    %9 = arith.addf %6, %8 : vector<8x128xf32>
    %cst_12 = arith.constant 0.000000e+00 : f32
    %10 = vector.broadcast %cst_12 : f32 to vector<8x128xf32>
    %11 = arith.maximumf %9, %10 : vector<8x128xf32>
    %c0_13 = arith.constant 0 : index
    %c0_14 = arith.constant 0 : index
    %12 = vector.load %arg5[%c0_13, %c0_14] : memref<128x64xf32, #tpu.memory_space<vmem>>, vector<128x64xf32>
    %cst_15 = arith.constant dense<0.000000e+00> : vector<8x64xf32>
    %13 = tpu.matmul %11, %12, %cst_15 {dimension_numbers = #tpu.dot_dimension_numbers<[1], [0], [0], [1], [0, 0, 1, 1], [], []>} : vector<8x128xf32>, vector<128x64xf32>, vector<8x64xf32> -> vector<8x64xf32>
    %c0_16 = arith.constant 0 : index
    %c0_17 = arith.constant 0 : index
    %14 = vector.load %arg6[%c0_16, %c0_17] : memref<1x64xf32, #tpu.memory_space<vmem>>, vector<1x64xf32>
    %15 = vector.broadcast %14 : vector<1x64xf32> to vector<8x64xf32>
    %16 = arith.addf %13, %15 : vector<8x64xf32>
    %cst_18 = arith.constant 0.000000e+00 : f32
    %17 = vector.broadcast %cst_18 : f32 to vector<8x64xf32>
    %18 = arith.maximumf %16, %17 : vector<8x64xf32>
    %c0_19 = arith.constant 0 : index
    %c0_20 = arith.constant 0 : index
    %19 = vector.load %arg7[%c0_19, %c0_20] : memref<1x64xf32, #tpu.memory_space<vmem>>, vector<1x64xf32>
    %cst_21 = arith.constant dense<0.000000e+00> : vector<1x8xf32>
    %20 = tpu.matmul %19, %18, %cst_21 {dimension_numbers = #tpu.dot_dimension_numbers<[1], [1], [0], [0], [0, 0, 1, 0], [], []>} : vector<1x64xf32>, vector<8x64xf32>, vector<1x8xf32> -> vector<1x8xf32>
    %c0_22 = arith.constant 0 : index
    %c0_23 = arith.constant 0 : index
    %21 = memref.load %arg8[%c0_22, %c0_23] : memref<1x1xf32, #tpu.memory_space<smem>>
    %22 = vector.broadcast %21 : f32 to vector<1x8xf32>
    %23 = arith.addf %20, %22 : vector<1x8xf32>
    %24 = arith.negf %23 : vector<1x8xf32>
    %25 = math.exp %24 : vector<1x8xf32>
    %cst_24 = arith.constant 1.000000e+00 : f32
    %26 = vector.broadcast %cst_24 : f32 to vector<1x8xf32>
    %27 = arith.addf %26, %25 : vector<1x8xf32>
    %28 = arith.divf %26, %27 : vector<1x8xf32>
    %c0_25 = arith.constant 0 : index
    %c0_26 = arith.constant 0 : index
    %29 = vector.load %arg9[%c0_25, %c0_26] : memref<1x8xf32, #tpu.memory_space<vmem>>, vector<1x8xf32>
    tpu.vector_store %arg9[%c0_25, %c0_26], %28 {strides = array<i32>} : memref<1x8xf32, #tpu.memory_space<vmem>>, vector<1x8xf32>,
    return
  }
  func.func @transform_0(%arg0: i32) -> (i32, i32) {
    %c0_i32 = arith.constant 0 : i32
    %c0_i32_0 = arith.constant 0 : i32
    return %arg0, %c0_i32 : i32, i32
  }
  func.func @transform_1(%arg0: i32) -> (i32, i32) {
    %c0_i32 = arith.constant 0 : i32
    %c0_i32_0 = arith.constant 0 : i32
    return %arg0, %c0_i32 : i32, i32
  }
  func.func @transform_2(%arg0: i32) -> (i32, i32) {
    %c0_i32 = arith.constant 0 : i32
    %c0_i32_0 = arith.constant 0 : i32
    %c0_i32_1 = arith.constant 0 : i32
    return %c0_i32, %c0_i32_0 : i32, i32
  }
  func.func @transform_3(%arg0: i32) -> (i32, i32) {
    %c0_i32 = arith.constant 0 : i32
    %c0_i32_0 = arith.constant 0 : i32
    %c0_i32_1 = arith.constant 0 : i32
    return %c0_i32, %c0_i32_0 : i32, i32
  }
  func.func @transform_4(%arg0: i32) -> (i32, i32) {
    %c0_i32 = arith.constant 0 : i32
    %c0_i32_0 = arith.constant 0 : i32
    %c0_i32_1 = arith.constant 0 : i32
    return %c0_i32, %c0_i32_0 : i32, i32
  }
  func.func @transform_5(%arg0: i32) -> (i32, i32) {
    %c0_i32 = arith.constant 0 : i32
    %c0_i32_0 = arith.constant 0 : i32
    %c0_i32_1 = arith.constant 0 : i32
    return %c0_i32, %c0_i32_0 : i32, i32
  }
  func.func @transform_6(%arg0: i32) -> (i32, i32) {
    %c0_i32 = arith.constant 0 : i32
    %c0_i32_0 = arith.constant 0 : i32
    %c0_i32_1 = arith.constant 0 : i32
    return %c0_i32, %c0_i32_0 : i32, i32
  }
  func.func @transform_7(%arg0: i32) -> (i32, i32) {
    %c0_i32 = arith.constant 0 : i32
    %c0_i32_0 = arith.constant 0 : i32
    %c0_i32_1 = arith.constant 0 : i32
    return %c0_i32, %c0_i32_0 : i32, i32
  }
  func.func @transform_8(%arg0: i32) -> (i32, i32) {
    %c0_i32 = arith.constant 0 : i32
    %c0_i32_0 = arith.constant 0 : i32
    return %c0_i32, %arg0 : i32, i32
  }
}

</mosaic_0001>

<bundles_post_ra>
// kernel: tpu_custom_call.1
= control target key start
LH: loop header
LB: loop body
LE: loop exit
PB: predicated region body
PF: predicated region fallthrough
CT: control target
= control target key end

     0   :  { %vm32_vm0 = vcmask 261120   ;;  %s489_s11 = smov 32   ;;  %v490_v3 = vmov 0.0|0.0   ;;  %vm491_vm1 = vmmov 0   ;;  %v492_v8 = vmov 0.0   ;;  %s647_s0 = inlined_call_operand.vmem [shape: f32[8,32], index: 0, kind: input, shape index: {}]   ;;  %s648_s1 = inlined_call_operand.vmem [shape: f32[8,32], index: 1, kind: input, shape index: {}]   ;;  %s649_s2 = inlined_call_operand.vmem [shape: f32[64,128], index: 2, kind: input, shape index: {}]   ;;  %s650_s3 = inlined_call_operand.vmem [shape: f32[1,128], index: 3, kind: input, shape index: {}]   ;;  %s651_s4 = inlined_call_operand.vmem [shape: f32[128,64], index: 4, kind: input, shape index: {}]   ;;  %s652_s5 = inlined_call_operand.vmem [shape: f32[1,64], index: 5, kind: input, shape index: {}]   ;;  %s653_s6 = inlined_call_operand.vmem [shape: f32[1,64], index: 6, kind: input, shape index: {}]   ;;  %s654_s7 = inlined_call_operand.<no memory space> [shape: f32[1,1], index: 7, kind: input, shape index: {}]   ;;  %s655_s8 = inlined_call_operand.hbm [shape: f32[1,8], index: 8, kind: output, shape index: {}]  }
   0x1   :  { %v34_v0 = vld [vmem:[%s648_s1] sm:$0xff]  ;;  %v43_v2 = vld [vmem:[%s649_s2 + $0x8] sm:$0xff]  ;;  %420 = vmatprep.subr.bf16.mxu0 %v490_v3  ;;  %v44_v5 = vld [vmem:[%s649_s2 + $0x10] sm:$0xff]  ;;  %377 = vmatprep.mubr.msk.f32.mxu0 %vm491_vm1, %v492_v8 }
   0x2   :  { %v42_v1 = vld [vmem:[%s649_s2] sm:$0xff]  ;;  %36 = vrot.lane.b32.xlu0 %v34_v0, %s489_s11  ;;  %v45_v6 = vld [vmem:[%s649_s2 + $0x18] sm:$0xff]  ;;  %432 = vmatprep.subr.bf16.mxu1 %v490_v3  ;;  %v133_v12 = vld [vmem:[%s651_s4 + $0x8] sm:$0xff] }
   0x3   :  { %v421_v4 = vpack.c.bf16 %v43_v2, %v42_v1  ;;  %v31_v7 = vld [vmem:[%s647_s0] sm:$0xff]  ;;  %v424_v9 = vpack.c.bf16 %v45_v6, %v44_v5  ;;  %412 = vmatprep.mubr.msk.f32.mxu1 %vm491_vm1, %v492_v8  ;;  %v47_v13 = vld [vmem:[%s649_s2 + $0x28] sm:$0xff]  ;;  %v134_v15 = vld [vmem:[%s651_s4 + $0x10] sm:$0xff] }
   0x4   :  { %33 = vst.msk [vmem:[#allocation2] sm:$0xff] %vm32_vm0, %v31_v7  ;;  %v46_v10 = vld [vmem:[%s649_s2 + $0x20] sm:$0xff]  ;;  %v135_v16 = vld [vmem:[%s651_s4 + $0x18] sm:$0xff]  ;;  %v137_v20 = vld [vmem:[%s651_s4 + $0x28] sm:$0xff] }
   0x5   :  { %422 = vmatpush3.bf16.msra.mxu0 %v421_v4  ;;  %v132_v11 = vld [vmem:[%s651_s4] sm:$0xff]  ;;  %v436_v17 = vpack.c.bf16 %v135_v16, %v134_v15  ;;  %v427_v18 = vpack.c.bf16 %v47_v13, %v46_v10  ;;  %v48_v21 = vld [vmem:[%s649_s2 + $0x30] sm:$0xff]  ;;  %v49_v22 = vld [vmem:[%s649_s2 + $0x38] sm:$0xff] }
   0x6   :  { %423 = vmatprep.subr.bf16.mxu0 %v490_v3  ;;  %v433_v14 = vpack.c.bf16 %v133_v12, %v132_v11  ;;  %v136_v19 = vld [vmem:[%s651_s4 + $0x20] sm:$0xff] }
   0x8   :  { %434 = vmatpush3.bf16.msra.mxu1 %v433_v14 }
   0x9   :  { %425 = vmatpush3.bf16.msra.mxu0 %v424_v9  ;;  %435 = vmatprep.subr.bf16.mxu1 %v490_v3 }
   0xa   :  { %426 = vmatprep.subr.bf16.mxu0 %v490_v3 }
   0xb   :  { %14 = vsyncpa [#allocation5], 0  ;;  %v439_v23 = vpack.c.bf16 %v137_v20, %v136_v19  ;;  %v430_v24 = vpack.c.bf16 %v49_v22, %v48_v21  ;;  %v138_v25 = vld [vmem:[%s651_s4 + $0x30] sm:$0xff]  ;;  %v139_v26 = vld [vmem:[%s651_s4 + $0x38] sm:$0xff]  ;;  %vm39_vm2 = vcmask 523520   ;;  %vm57_vm3 = vcmask 523264  }
   0xc   :  { %437 = vmatpush3.bf16.msra.mxu1 %v436_v17  ;;  %v442_v27 = vpack.c.bf16 %v139_v26, %v138_v25  ;;  %v140_v28 = vld [vmem:[%s651_s4 + $0x40] sm:$0xff]  ;;  %v141_v29 = vld [vmem:[%s651_s4 + $0x48] sm:$0xff]  ;;  %v142_v31 = vld [vmem:[%s651_s4 + $0x50] sm:$0xff]  ;;  %v228_v53 = vstv %s654_s7  ;;  %vm311_vm4 = vcmask 57344  }
   0xd   :  { %428 = vmatpush3.bf16.msra.mxu0 %v427_v18  ;;  %438 = vmatprep.subr.bf16.mxu1 %v490_v3  ;;  %v445_v30 = vpack.c.bf16 %v141_v29, %v140_v28  ;;  %v143_v32 = vld [vmem:[%s651_s4 + $0x58] sm:$0xff]  ;;  %v144_v34 = vld [vmem:[%s651_s4 + $0x60] sm:$0xff]  ;;  %v145_v35 = vld [vmem:[%s651_s4 + $0x68] sm:$0xff] }
   0xe   :  { %429 = vmatprep.subr.bf16.mxu0 %v490_v3  ;;  %v448_v33 = vpack.c.bf16 %v143_v32, %v142_v31  ;;  %v451_v36 = vpack.c.bf16 %v145_v35, %v144_v34  ;;  %v146_v39 = vld [vmem:[%s651_s4 + $0x70] sm:$0xff]  ;;  %v147_v40 = vld [vmem:[%s651_s4 + $0x78] sm:$0xff]  ;;  %v327_v42 = vld [vmem:[%s650_s3] ss:$0 sm:$0xff] }
   0xf   :  { %v454_v41 = vpack.c.bf16 %v147_v40, %v146_v39  ;;  %v329_v47 = vld [vmem:[%s652_s5] ss:$0 sm:$0xff]  ;;  %s493_s5 = smov [#allocation4]  }
  0x10   :  { %440 = vmatpush3.bf16.msra.mxu1 %v439_v23  ;;  %v226_v52 = vld [vmem:[%s653_s6] sm:$0x1]  ;;  %s319_s1 = sshll.u32 %s493_s5, 4  ;;  %s320_s1 = int_to_ptr.vmem [resolvable:$true] %s319_s1 }
  0x11   :  { %431 = vmatpush3.bf16.msra.mxu0 %v430_v24  ;;  %441 = vmatprep.subr.bf16.mxu1 %v490_v3  ;;  %s465_s6 = scalar_lea.vmem %s320_s1, 16  ;;  %s469_s15 = scalar_lea.vmem %s320_s1, 32 }
  0x12   :  { %415 = vmatprep.subr.mxu0 %v492_v8  ;;  %p466_p0 = scmp.ne.s32.totalorder %s320_s1, %s465_s6  ;;  %p470_p1 = scmp.lt.s32.totalorder %s320_s1, %s320_s1 }
  0x13   :  { %p471_p2 = scmp.lt.s32.totalorder %s469_s15, %s465_s6 }
  0x14   :  { %443 = vmatpush3.bf16.msra.mxu1 %v442_v27 }
  0x15   :  { %444 = vmatprep.subr.bf16.mxu1 %v490_v3  ;;  %p472_p3 = por %p471_p2, %p470_p1 }
  0x17   :  { %p473_p4 = pnand %p472_p3, %p466_p0 }
  0x18   :  { %446 = vmatpush3.bf16.msra.mxu1 %v445_v30 }
  0x19   :  { %447 = vmatprep.subr.bf16.mxu1 %v490_v3 }
  0x1c   :  { %449 = vmatpush3.bf16.msra.mxu1 %v448_v33 }
  0x1d   :  { %450 = vmatprep.subr.bf16.mxu1 %v490_v3 }
  0x20   :  { %452 = vmatpush3.bf16.msra.mxu1 %v451_v36 }
  0x21   :  { %453 = vmatprep.subr.bf16.mxu1 %v490_v3 }
  0x24   :  { %455 = vmatpush3.bf16.msra.mxu1 %v454_v41 }
  0x74   :  { %v37_v37 = vpop.permute.xlu0 %36 }
  0x75   :  { %40 = vst.msk [vmem:[#allocation2] sm:$0xff] %vm39_vm2, %v37_v37 }
  0x7c   :  { %v41_v38 = vld [vmem:[#allocation2] sm:$0xff] }
  0x7d   :  { %378 = vmatmul.mubr.msk.f32.vlgmr.msra.gmra.mrb[0].mxu0 %vm57_vm3, %v41_v38 }
  0x7e   :  { %417 = vmatprep.mubr.msk.f32.mxu0 %vm491_vm1, %v492_v8 }
 0x150   :  { %v127_v43 = vpop.f32.mrb[0].mxu0 }
 0x151   :  { %v128_v44 = vadd.f32 %v327_v42, %v127_v43  ;;  %v379_v45 = vpop.f32.mrb[1].mxu0 }
 0x153   :  { %v131_v46 = vmax.f32 %v128_v44, 0.0 }
 0x155   :  { %413 = vmatmul.mubr.f32.vlgmr.msra.gmra.mrb[0].mxu1 %v131_v46 }
 0x228   :  { %v221_v48 = vpop.f32.mrb[0].mxu1 }
 0x229   :  { %v222_v49 = vadd.f32 %v329_v47, %v221_v48  ;;  %v414_v50 = vpop.f32.mrb[1].mxu1 }
 0x22b   :  { %v225_v51 = vmax.f32 %v222_v49, 0.0 }
 0x22d   :  { %416 = vmatpush3.xpose.msk.msra.mxu0 %vm57_vm3, %v225_v51 }
 0x230   :  { %418 = vmatmul.mubr.msk.f32.vlgmr.msra.gmra.mrb[2].mxu0 %vm57_vm3, %v226_v52 }
 0x303   :  { %v301_v54 = vpop.f32.mrb[2].mxu0 }
 0x304   :  { %v302_v55 = vadd.f32 %v301_v54, %v228_v53  ;;  %v419_v56 = vpop.f32.mrb[3].mxu0 }
 0x306   :  { %v332_v57 = vmul.f32 -1.442695, %v302_v55 }
 0x308   :  { %461 = vpow2.f32 %v332_v57 }
 0x312   :  { %v462_v58 = vpop.eup %461 }
 0x313   :  { %v308_v59 = vadd.f32 1.0, %v462_v58 }
 0x315   :  { %463 = vrcp.f32 %v308_v59 }
 0x31f   :  { %v464_v60 = vpop.eup %463 }
 0x320   :  { %312 = vst.msk [vmem:[#allocation4] sm:$0x1] %vm311_vm4, %v464_v60 }
 0x321   :  { %476 = shalt.err (!%p473_p4)
}
 0x322   :  { %s477_s2 = scalar_lea.hbm %s655_s8, 16 }
 0x323   :  { %p478_p5 = scmp.ne.s32.totalorder %s655_s8, %s477_s2  ;;  %p481_p6 = scmp.lt.u32.totalorder %s477_s2, %s655_s8 }
 0x325   :  { %p483_p7 = pnand %p481_p6, %p478_p5 }
 0x327   :  { %486 = shalt.err (!%p483_p7)
}
 0x328   :  { %322 = dma.vmem_to_hbm [thread:$0]  %s320_s1, 16, %s655_s8, [#allocation5]  }
 0x329   :  { %487 = dma.done.wait [#allocation5], 16  }
 0x32a   :  { %488 = vsyncadd [#allocation5], 4294967280 }
 0x32b   :  { %326 = vsyncpa [#allocation5], 1 }

</bundles_post_ra>
